<compile_context>
chip_gen: v7x
topology: tpu7x:2x2x1
jax: 0.10.0
libtpu: 0.0.40
codegen_flags: <defaults>
</compile_context>

<pallas_src>
import jax
import jax.numpy as jnp
from jax.experimental import pallas as pl
from jax.experimental.pallas import tpu as pltpu

IN_DIM = 28 * 28        # 784 (lane-aligned enough: equals full array dim)
HID_DIM = 300
OUT_DIM = 2
HID_PAD = 384           # 300 -> next multiple of 128
OUT_PAD = 128           # 2   -> 128 (lane-dense output stores)
NEG_SLOPE = 0.2


def _round_up(x, m):
    return ((x + m - 1) // m) * m


def _leaky_relu(x, slope=NEG_SLOPE):
    return jnp.where(x > 0, x, slope * x)


def discriminator_kernel(x_ref, w1_ref, b1_ref, w2_ref, b2_ref, o_ref):
    # x_ref: (TB, IN_DIM) bf16; weights bf16; biases f32; o_ref: (TB, OUT_PAD) f32
    x = x_ref[...]
    # Layer 1: bf16 MXU matmul, f32 accumulate, f32 epilogue.
    h = jnp.dot(x, w1_ref[...], preferred_element_type=jnp.float32) + b1_ref[...]
    h = _leaky_relu(h)
    # Layer 2 (padded to 128 output lanes; padded columns stay exactly zero).
    h = h.astype(jnp.bfloat16)
    o = jnp.dot(h, w2_ref[...], preferred_element_type=jnp.float32) + b2_ref[...]
    o_ref[...] = _leaky_relu(o)


def discriminator_forward(x, w1, b1, w2, b2, *, block_batch=512):
    """x: (B, 784) f32.  w1: (784, 300), b1: (300,), w2: (300, 2), b2: (2,)."""
    B = x.shape[0]

    # Batch tile: multiple of 8 sublanes, capped by block_batch.
    TB = min(block_batch, _round_up(B, 8))
    B_pad = _round_up(B, TB)

    # --- wrapper-side layout plumbing (padding + dtype) --------------------
    x_p = x if B_pad == B else jnp.pad(x, ((0, B_pad - B), (0, 0)))
    x_p = x_p.astype(jnp.bfloat16)

    w1_p = jnp.zeros((IN_DIM, HID_PAD), jnp.bfloat16)
    w1_p = w1_p.at[:, :HID_DIM].set(w1.astype(jnp.bfloat16))
    b1_p = jnp.zeros((1, HID_PAD), jnp.float32)
    b1_p = b1_p.at[:, :HID_DIM].set(b1.reshape(1, HID_DIM).astype(jnp.float32))

    w2_p = jnp.zeros((HID_PAD, OUT_PAD), jnp.bfloat16)
    w2_p = w2_p.at[:HID_DIM, :OUT_DIM].set(w2.astype(jnp.bfloat16))
    b2_p = jnp.zeros((1, OUT_PAD), jnp.float32)
    b2_p = b2_p.at[:, :OUT_DIM].set(b2.reshape(1, OUT_DIM).astype(jnp.float32))

    # --- VMEM budget sized to the tile (double-buffered streams + weights) --
    vmem_bytes = (
        2 * TB * IN_DIM * 2            # x bf16, double-buffered
        + 2 * TB * OUT_PAD * 4         # out f32, double-buffered
        + 2 * IN_DIM * HID_PAD * 2     # W1 bf16 (buffered)
        + 2 * HID_PAD * OUT_PAD * 2    # W2 bf16 (buffered)
        + 2 * (HID_PAD + OUT_PAD) * 4  # biases f32
        + TB * HID_PAD * 4             # hidden activation temporaries
        + (4 << 20)                    # slack
    )
    vmem_limit = int(min(max(vmem_bytes, 16 << 20), 32 << 20))

    grid = (B_pad // TB,)

    out = pl.pallas_call(
        discriminator_kernel,
        out_shape=jax.ShapeDtypeStruct((B_pad, OUT_PAD), jnp.float32),
        grid=grid,
        in_specs=[
            pl.BlockSpec((TB, IN_DIM), lambda i: (i, 0)),      # x streams
            pl.BlockSpec((IN_DIM, HID_PAD), lambda i: (0, 0)),  # W1 resident
            pl.BlockSpec((1, HID_PAD), lambda i: (0, 0)),       # b1 resident
            pl.BlockSpec((HID_PAD, OUT_PAD), lambda i: (0, 0)),  # W2 resident
            pl.BlockSpec((1, OUT_PAD), lambda i: (0, 0)),        # b2 resident
        ],
        out_specs=pl.BlockSpec((TB, OUT_PAD), lambda i: (i, 0)),
        compiler_params=pltpu.CompilerParams(
            dimension_semantics=("parallel",),
            vmem_limit_bytes=vmem_limit,
        ),
    )(x_p, w1_p, b1_p, w2_p, b2_p)

    # Slice away batch + lane padding.
    return out[:B, :OUT_DIM]


def init_params(key):
    # Deterministic synthetic init (shapes match nn.Linear(784,300), nn.Linear(300,2)).
    k1, k2, k3, k4 = jax.random.split(key, 4)
    w1 = jax.random.normal(k1, (IN_DIM, HID_DIM), jnp.float32) * 0.02
    b1 = jax.random.normal(k2, (HID_DIM,), jnp.float32) * 0.02
    w2 = jax.random.normal(k3, (HID_DIM, OUT_DIM), jnp.float32) * 0.02
    b2 = jax.random.normal(k4, (OUT_DIM,), jnp.float32) * 0.02
    return w1, b1, w2, b2


def reference_forward_f32(x, w1, b1, w2, b2):
    h = jax.nn.leaky_relu(x @ w1 + b1[None, :], NEG_SLOPE)
    return jax.nn.leaky_relu(h @ w2 + b2[None, :], NEG_SLOPE)


def reference_forward_bf16(x, w1, b1, w2, b2):
    # Mirrors the kernel's arithmetic (bf16 MXU inputs, f32 accum/epilogue).
    h = jnp.dot(x.astype(jnp.bfloat16), w1.astype(jnp.bfloat16),
                preferred_element_type=jnp.float32) + b1[None, :]
    h = jax.nn.leaky_relu(h, NEG_SLOPE)
    o = jnp.dot(h.astype(jnp.bfloat16), w2.astype(jnp.bfloat16),
                preferred_element_type=jnp.float32) + b2[None, :]
    return jax.nn.leaky_relu(o, NEG_SLOPE)


if __name__ == "__main__":
    key = jax.random.PRNGKey(0)
    kx, kp = jax.random.split(key)

    B = 8
    x = jax.random.normal(kx, (B, IN_DIM), jnp.float32)
    w1, b1, w2, b2 = init_params(kp)

    out = discriminator_forward(x, w1, b1, w2, b2)
    out = jax.block_until_ready(out)
    assert out.shape == (B, OUT_DIM)

    # Tight check vs a reference using the same bf16 matmul arithmetic.
    ref_bf16 = reference_forward_bf16(x, w1, b1, w2, b2)
    assert jnp.allclose(out, ref_bf16, atol=1e-3, rtol=1e-3), "mismatch vs bf16 reference"

    # Loose check vs the exact f32 PyTorch-equivalent forward.
    ref_f32 = reference_forward_f32(x, w1, b1, w2, b2)
    assert jnp.allclose(out, ref_f32, atol=5e-2, rtol=5e-2), "mismatch vs f32 reference"

    print("KERNEL_OK")
</pallas_src>

<mosaic_0001>
module attributes {stable_mosaic.version = 11 : i64} {
  func.func @discriminator_kernel(%arg0: i32, %arg1: memref<8x784xbf16, #tpu.memory_space<vmem>>, %arg2: memref<784x384xbf16, #tpu.memory_space<vmem>>, %arg3: memref<1x384xf32, #tpu.memory_space<vmem>>, %arg4: memref<384x128xbf16, #tpu.memory_space<vmem>>, %arg5: memref<1x128xf32, #tpu.memory_space<vmem>>, %arg6: memref<8x128xf32, #tpu.memory_space<vmem>>) attributes {dimension_semantics = [#tpu.dimension_semantics<parallel>], iteration_bounds = array<i64: 1>, scalar_prefetch = 0 : i64, scratch_operands = 0 : i64, tpu.core_type = #tpu.core_type<tc>, window_params = [{transform_indices = @transform_0, window_bounds = array<i64: 8, 784>}, {pipeline_mode = #tpu.pipeline_mode<synchronous>, transform_indices = @transform_1, window_bounds = array<i64: 784, 384>}, {pipeline_mode = #tpu.pipeline_mode<synchronous>, transform_indices = @transform_2, window_bounds = array<i64: 1, 384>}, {pipeline_mode = #tpu.pipeline_mode<synchronous>, transform_indices = @transform_3, window_bounds = array<i64: 384, 128>}, {pipeline_mode = #tpu.pipeline_mode<synchronous>, transform_indices = @transform_4, window_bounds = array<i64: 1, 128>}, {transform_indices = @transform_5, window_bounds = array<i64: 8, 128>}]} {
    %c0 = arith.constant 0 : index
    %c0_0 = arith.constant 0 : index
    %0 = vector.load %arg1[%c0, %c0_0] : memref<8x784xbf16, #tpu.memory_space<vmem>>, vector<8x784xbf16>
    %c0_1 = arith.constant 0 : index
    %c0_2 = arith.constant 0 : index
    %1 = vector.load %arg2[%c0_1, %c0_2] : memref<784x384xbf16, #tpu.memory_space<vmem>>, vector<784x384xbf16>
    %cst = arith.constant dense<0.000000e+00> : vector<8x384xf32>
    %2 = tpu.matmul %0, %1, %cst {dimension_numbers = #tpu.dot_dimension_numbers<[1], [0], [0], [1], [0, 0, 1, 1], [], []>} : vector<8x784xbf16>, vector<784x384xbf16>, vector<8x384xf32> -> vector<8x384xf32>
    %c0_3 = arith.constant 0 : index
    %c0_4 = arith.constant 0 : index
    %3 = vector.load %arg3[%c0_3, %c0_4] : memref<1x384xf32, #tpu.memory_space<vmem>>, vector<1x384xf32>
    %4 = vector.broadcast %3 : vector<1x384xf32> to vector<8x384xf32>
    %5 = arith.addf %2, %4 : vector<8x384xf32>
    %cst_5 = arith.constant 0.000000e+00 : f32
    %6 = vector.broadcast %cst_5 : f32 to vector<8x384xf32>
    %7 = arith.cmpf ogt, %5, %6 : vector<8x384xf32>
    %cst_6 = arith.constant 2.000000e-01 : f32
    %8 = vector.broadcast %cst_6 : f32 to vector<8x384xf32>
    %9 = arith.mulf %8, %5 : vector<8x384xf32>
    %10 = arith.select %7, %5, %9 : vector<8x384xi1>, vector<8x384xf32>
    %11 = arith.truncf %10 : vector<8x384xf32> to vector<8x384xbf16>
    %c0_7 = arith.constant 0 : index
    %c0_8 = arith.constant 0 : index
    %12 = vector.load %arg4[%c0_7, %c0_8] : memref<384x128xbf16, #tpu.memory_space<vmem>>, vector<384x128xbf16>
    %cst_9 = arith.constant dense<0.000000e+00> : vector<8x128xf32>
    %13 = tpu.matmul %11, %12, %cst_9 {dimension_numbers = #tpu.dot_dimension_numbers<[1], [0], [0], [1], [0, 0, 1, 1], [], []>} : vector<8x384xbf16>, vector<384x128xbf16>, vector<8x128xf32> -> vector<8x128xf32>
    %c0_10 = arith.constant 0 : index
    %c0_11 = arith.constant 0 : index
    %14 = vector.load %arg5[%c0_10, %c0_11] : memref<1x128xf32, #tpu.memory_space<vmem>>, vector<1x128xf32>
    %15 = vector.broadcast %14 : vector<1x128xf32> to vector<8x128xf32>
    %16 = arith.addf %13, %15 : vector<8x128xf32>
    %cst_12 = arith.constant 0.000000e+00 : f32
    %17 = vector.broadcast %cst_12 : f32 to vector<8x128xf32>
    %18 = arith.cmpf ogt, %16, %17 : vector<8x128xf32>
    %cst_13 = arith.constant 2.000000e-01 : f32
    %19 = vector.broadcast %cst_13 : f32 to vector<8x128xf32>
    %20 = arith.mulf %19, %16 : vector<8x128xf32>
    %21 = arith.select %18, %16, %20 : vector<8x128xi1>, vector<8x128xf32>
    %c0_14 = arith.constant 0 : index
    %c0_15 = arith.constant 0 : index
    %22 = vector.load %arg6[%c0_14, %c0_15] : memref<8x128xf32, #tpu.memory_space<vmem>>, vector<8x128xf32>
    tpu.vector_store %arg6[%c0_14, %c0_15], %21 {strides = array<i32>} : memref<8x128xf32, #tpu.memory_space<vmem>>, vector<8x128xf32>,
    return
  }
  func.func @transform_0(%arg0: i32) -> (i32, i32) {
    %c0_i32 = arith.constant 0 : i32
    %c0_i32_0 = arith.constant 0 : i32
    return %arg0, %c0_i32 : i32, i32
  }
  func.func @transform_1(%arg0: i32) -> (i32, i32) {
    %c0_i32 = arith.constant 0 : i32
    %c0_i32_0 = arith.constant 0 : i32
    %c0_i32_1 = arith.constant 0 : i32
    return %c0_i32, %c0_i32_0 : i32, i32
  }
  func.func @transform_2(%arg0: i32) -> (i32, i32) {
    %c0_i32 = arith.constant 0 : i32
    %c0_i32_0 = arith.constant 0 : i32
    %c0_i32_1 = arith.constant 0 : i32
    return %c0_i32, %c0_i32_0 : i32, i32
  }
  func.func @transform_3(%arg0: i32) -> (i32, i32) {
    %c0_i32 = arith.constant 0 : i32
    %c0_i32_0 = arith.constant 0 : i32
    %c0_i32_1 = arith.constant 0 : i32
    return %c0_i32, %c0_i32_0 : i32, i32
  }
  func.func @transform_4(%arg0: i32) -> (i32, i32) {
    %c0_i32 = arith.constant 0 : i32
    %c0_i32_0 = arith.constant 0 : i32
    %c0_i32_1 = arith.constant 0 : i32
    return %c0_i32, %c0_i32_0 : i32, i32
  }
  func.func @transform_5(%arg0: i32) -> (i32, i32) {
    %c0_i32 = arith.constant 0 : i32
    %c0_i32_0 = arith.constant 0 : i32
    return %arg0, %c0_i32 : i32, i32
  }
}

</mosaic_0001>

<bundles_post_ra>
// kernel: tpu_custom_call.1
= control target key start
LH: loop header
LB: loop body
LE: loop exit
PB: predicated region body
PF: predicated region fallthrough
CT: control target
= control target key end

     0   :  { %10 = vsyncpa [#allocation3], 0  ;;  %s2497_s0 = inlined_call_operand.hbm [shape: bf16[8,784], index: 0, kind: input, shape index: {}]   ;;  %s2498_s1 = inlined_call_operand.hbm [shape: bf16[784,384], index: 1, kind: input, shape index: {}]   ;;  %s2499_s2 = inlined_call_operand.vmem [shape: f32[1,384], index: 2, kind: input, shape index: {}]   ;;  %s2500_s3 = inlined_call_operand.hbm [shape: bf16[384,128], index: 3, kind: input, shape index: {}]   ;;  %s2501_s4 = inlined_call_operand.vmem [shape: f32[1,128], index: 4, kind: input, shape index: {}]   ;;  %s2502_s5 = inlined_call_operand.hbm [shape: f32[8,128], index: 5, kind: output, shape index: {}]  }
   0x1   :  { %11 = vsyncpa [#allocation6], 0 }
   0x2   :  { %12 = vsyncpa [#allocation4], 0  ;;  %s2375_s18 = smov [#allocation5]   ;;  %s2281_s22 = scalar_lea.hbm %s2498_s1, 18816 }
   0x3   :  { %s28_s19 = sshll.u32 %s2375_s18, 4  ;;  %p2282_p0 = scmp.ne.s32.totalorder %s2498_s1, %s2281_s22  ;;  %s29_s19 = int_to_ptr.vmem [resolvable:$true] %s28_s19 }
   0x4   :  { %p2285_p1 = scmp.lt.u32.totalorder %s2281_s22, %s2498_s1 }
   0x6   :  { %p2287_p2 = pnand %p2285_p1, %p2282_p0 }
   0x8   :  { %2290 = shalt.err (!%p2287_p2)
}
   0x9   :  { %s2291_s27 = scalar_lea.vmem %s29_s19, 18816  ;;  %p2296_p4 = scmp.lt.s32.totalorder %s29_s19, %s29_s19 }
   0xa   :  { %p2292_p3 = scmp.ne.s32.totalorder %s29_s19, %s2291_s27  ;;  %p2297_p5 = scmp.lt.s32.totalorder %s2291_s27, %s2291_s27 }
   0xc   :  { %p2298_p6 = por %p2297_p5, %p2296_p4 }
   0xe   :  { %p2299_p7 = pnand %p2298_p6, %p2292_p3 }
  0x10   :  { %2302 = shalt.err (!%p2299_p7)
}
  0x11   :  { %s2376_s28 = smov 192   ;;  %s2377_s29 = smov 12  }
  0x12   :  { %34 = dma.hbm_to_vmem [thread:$0]  %s2498_s1, 18816, %s29_s19, [#allocation6], %s2376_s28, %s2376_s28, %s2377_s29  }
  0x13   :  { %s2378_s7 = smov [#allocation2]   ;;  %s2379_s9 = smov [#allocation7]  }
  0x14   :  { %s19_s8 = sshll.u32 %s2378_s7, 4  ;;  %s42_s10 = sshll.u32 %s2379_s9, 4  ;;  %s20_s8 = int_to_ptr.vmem [resolvable:$true] %s19_s8  ;;  %s43_s10 = int_to_ptr.vmem [resolvable:$true] %s42_s10 }
  0x15   :  { %s2303_s13 = scalar_lea.hbm %s2497_s0, 448 }
  0x16   :  { %p2304_p8 = scmp.ne.s32.totalorder %s2497_s0, %s2303_s13  ;;  %p2307_p9 = scmp.lt.u32.totalorder %s2303_s13, %s2497_s0 }
  0x18   :  { %p2309_p10 = pnand %p2307_p9, %p2304_p8 }
  0x1a   :  { %2312 = shalt.err (!%p2309_p10)
}
  0x1b   :  { %s2313_s1 = scalar_lea.vmem %s20_s8, 448  ;;  %p2318_p12 = scmp.lt.s32.totalorder %s20_s8, %s20_s8 }
  0x1c   :  { %p2314_p11 = scmp.ne.s32.totalorder %s20_s8, %s2313_s1  ;;  %p2319_p13 = scmp.lt.s32.totalorder %s2313_s1, %s2313_s1 }
  0x1e   :  { %p2320_p0 = por %p2319_p13, %p2318_p12 }
  0x20   :  { %p2321_p1 = pnand %p2320_p0, %p2314_p11 }
  0x22   :  { %2324 = shalt.err (!%p2321_p1)
}
  0x23   :  { %22 = dma.hbm_to_vmem [thread:$0]  %s2497_s0, 448, %s20_s8, [#allocation3]  }
  0x24   :  { %s2325_s22 = scalar_lea.hbm %s2500_s3, 3072 }
  0x25   :  { %p2326_p2 = scmp.ne.s32.totalorder %s2500_s3, %s2325_s22  ;;  %p2329_p3 = scmp.lt.u32.totalorder %s2325_s22, %s2500_s3 }
  0x27   :  { %p2331_p4 = pnand %p2329_p3, %p2326_p2 }
  0x29   :  { %2334 = shalt.err (!%p2331_p4)
}
  0x2a   :  { %s2335_s27 = scalar_lea.vmem %s43_s10, 3072  ;;  %p2340_p6 = scmp.lt.s32.totalorder %s43_s10, %s43_s10 }
  0x2b   :  { %p2336_p5 = scmp.ne.s32.totalorder %s43_s10, %s2335_s27  ;;  %p2341_p7 = scmp.lt.s32.totalorder %s2335_s27, %s2335_s27 }
  0x2d   :  { %p2342_p8 = por %p2341_p7, %p2340_p6 }
  0x2f   :  { %p2343_p9 = pnand %p2342_p8, %p2336_p5 }
  0x31   :  { %2346 = shalt.err (!%p2343_p9)
}
  0x32   :  { %s2380_s0 = smov 64   ;;  %s2381_s28 = smov 4  }
  0x33   :  { %48 = dma.hbm_to_vmem [thread:$0]  %s2500_s3, 3072, %s43_s10, [#allocation6], %s2380_s0, %s2380_s0, %s2381_s28  }
  0x34   :  { %2369 = dma.done.wait [#allocation3], 448  }
  0x35   :  { %2370 = vsyncadd [#allocation3], 4294966848 }
  0x36   :  { %2371 = dma.done.wait [#allocation6], 21888  }
  0x37   :  { %2372 = vsyncadd [#allocation6], 4294945408  ;;  %v2382_v0 = vmov 0   ;;  %v2054_v1 = vld [vmem:[#allocation5 + $0x4] ss:$12 sps:$4 sm:$0xff]   ;;  %vm1086_vm0 = vcmask 130048  }
  0x38   :  { %1245 = vmatprep.mubr.bf16.mxu1 %v2382_v0  ;;  %v2056_v2 = vld [vmem:[#allocation5] ss:$12 sps:$4 sm:$0xff]   ;;  %1090 = vmatprep.subr.bf16.mxu0 %v2054_v1  ;;  %v2057_v3 = vld [vmem:[#allocation5 + $0x1c] ss:$12 sps:$4 sm:$0xff]   ;;  %v2059_v4 = vld [vmem:[#allocation5 + $0x18] ss:$12 sps:$4 sm:$0xff]  }
  0x39   :  { %1091 = vmatpush1.bf16.msra.mxu0 %v2056_v2  ;;  %v2060_v5 = vld [vmem:[#allocation5 + $0x34] ss:$12 sps:$4 sm:$0xff]   ;;  %v2062_v6 = vld [vmem:[#allocation5 + $0x30] ss:$12 sps:$4 sm:$0xff]   ;;  %v2063_v7 = vld [vmem:[#allocation5 + $0x4c] ss:$12 sps:$4 sm:$0xff]  }
  0x3a   :  { %1092 = vmatprep.subr.bf16.mxu0 %v2057_v3  ;;  %v2065_v8 = vld [vmem:[#allocation5 + $0x48] ss:$12 sps:$4 sm:$0xff]   ;;  %v2066_v9 = vld [vmem:[#allocation5 + $0x64] ss:$12 sps:$4 sm:$0xff]   ;;  %v2068_v10 = vld [vmem:[#allocation5 + $0x60] ss:$12 sps:$4 sm:$0xff]  }
  0x3b   :  { %v2069_v11 = vld [vmem:[#allocation5 + $0x7c] ss:$12 sps:$4 sm:$0xff]   ;;  %v2071_v12 = vld [vmem:[#allocation5 + $0x78] ss:$12 sps:$4 sm:$0xff]   ;;  %v2098_v14 = vld [vmem:[#allocation5 + $0x480] ss:$12 sps:$4 sm:$0xff]  }
  0x3c   :  { %v2096_v13 = vld [vmem:[#allocation5 + $0x484] ss:$12 sps:$4 sm:$0xff]   ;;  %v2072_v15 = vld [vmem:[#allocation5 + $0x94] ss:$12 sps:$4 sm:$0xff]   ;;  %v2452_v18 = vld [vmem:[#allocation2 + $0x18] ss:$0 sps:$4 sm:$0xff]  }
  0x3d   :  { %1093 = vmatpush1.bf16.msra.mxu0 %v2059_v4  ;;  %v2074_v16 = vld [vmem:[#allocation5 + $0x90] ss:$12 sps:$4 sm:$0xff]   ;;  %1213 = vmatprep.subr.bf16.mxu1 %v2096_v13  ;;  %v2102_v17 = vld [vmem:[#allocation5 + $0xc8] ss:$12 sps:$4 sm:$0xff]   ;;  %v2075_v20 = vld [vmem:[#allocation5 + $0xac] ss:$12 sps:$4 sm:$0xff]  }
  0x3e   :  { %1094 = vmatprep.subr.bf16.mxu0 %v2060_v5  ;;  %1214 = vmatpush1.bf16.msra.mxu1 %v2098_v14  ;;  %v2104_v19 = vld [vmem:[#allocation5 + $0x8] ss:$12 sps:$4 sm:$0xff]   ;;  %v2108_v22 = vld [vmem:[#allocation5 + $0xe0] ss:$12 sps:$4 sm:$0xff]   ;;  %v2078_v25 = vld [vmem:[#allocation5 + $0xc4] ss:$12 sps:$4 sm:$0xff]  }
  0x3f   :  { %1906 = vmatprep.subr.bf16.mxu1 %v2102_v17  ;;  %v2077_v21 = vld [vmem:[#allocation5 + $0xa8] ss:$12 sps:$4 sm:$0xff]   ;;  %v2109_v23 = vld [vmem:[#allocation5 + $0x20] ss:$12 sps:$4 sm:$0xff]   ;;  %v2115_v27 = vld [vmem:[#allocation5 + $0xf8] ss:$12 sps:$4 sm:$0xff]  }
  0x40   :  { %v61_v24 = vld [vmem:[#allocation2] sm:$0xff]  ;;  %v2080_v29 = vld [vmem:[#allocation5 + $0xc0] ss:$12 sps:$4 sm:$0xff]   ;;  %v2120_v31 = vld [vmem:[#allocation5 + $0x110] ss:$12 sps:$4 sm:$0xff]   ;;  %vm2384_vm1 = vmmov 0  }
  0x41   :  { %1095 = vmatpush1.bf16.msra.mxu0 %v2062_v6  ;;  %1879 = vmatmul.mubr.msk.bf16.vlgmr.msra.gmra.mrb[0].mxu1 %vm1086_vm0, %v2452_v18  ;;  %v1726_v26 = vcombine.high %v61_v24, %v61_v24  ;;  %v2116_v28 = vld [vmem:[#allocation5 + $0x38] ss:$12 sps:$4 sm:$0xff]   ;;  %v2081_v30 = vld [vmem:[#allocation5 + $0xdc] ss:$12 sps:$4 sm:$0xff]   ;;  %v2084_v34 = vld [vmem:[#allocation5 + $0xf4] ss:$12 sps:$4 sm:$0xff]   ;;  %v1725_v54 = vcombine.low %v61_v24, %v61_v24 }
  0x42   :  { %1096 = vmatprep.subr.bf16.mxu0 %v2063_v7  ;;  %1907 = vmatpush3.bf16.msra.mxu1 %v2104_v19  ;;  %v2121_v32 = vld [vmem:[#allocation5 + $0x50] ss:$12 sps:$4 sm:$0xff]   ;;  %v2083_v33 = vld [vmem:[#allocation5 + $0xd8] ss:$12 sps:$4 sm:$0xff]   ;;  %v2125_v35 = vld [vmem:[#allocation5 + $0x128] ss:$12 sps:$4 sm:$0xff]  }
  0x43   :  { %1908 = vmatprep.subr.bf16.mxu1 %v2108_v22  ;;  %1122 = vmatprep.mubr.bf16.mxu0 %v1726_v26  ;;  %v2086_v36 = vld [vmem:[#allocation5 + $0xf0] ss:$12 sps:$4 sm:$0xff]   ;;  %v2126_v37 = vld [vmem:[#allocation5 + $0x68] ss:$12 sps:$4 sm:$0xff]   ;;  %v2130_v38 = vld [vmem:[#allocation5 + $0x140] ss:$12 sps:$4 sm:$0xff]  }
  0x44   :  { %1286 = vmatprep.mubr.bf16.mxu1 %v1726_v26  ;;  %v2087_v39 = vld [vmem:[#allocation5 + $0x10c] ss:$12 sps:$4 sm:$0xff]   ;;  %v2089_v40 = vld [vmem:[#allocation5 + $0x108] ss:$12 sps:$4 sm:$0xff]   ;;  %v2090_v43 = vld [vmem:[#allocation5 + $0x124] ss:$12 sps:$4 sm:$0xff]  }
  0x45   :  { %1097 = vmatpush1.bf16.msra.mxu0 %v2065_v8  ;;  %v2131_v41 = vld [vmem:[#allocation5 + $0x80] ss:$12 sps:$4 sm:$0xff]   ;;  %v2135_v42 = vld [vmem:[#allocation5 + $0x158] ss:$12 sps:$4 sm:$0xff]   ;;  %v2140_v46 = vld [vmem:[#allocation5 + $0x170] ss:$12 sps:$4 sm:$0xff]  }
  0x46   :  { %1098 = vmatprep.subr.bf16.mxu0 %v2066_v9  ;;  %1909 = vmatpush3.bf16.msra.mxu1 %v2109_v23  ;;  %v2092_v44 = vld [vmem:[#allocation5 + $0x120] ss:$12 sps:$4 sm:$0xff]   ;;  %v2136_v45 = vld [vmem:[#allocation5 + $0x98] ss:$12 sps:$4 sm:$0xff]   ;;  %v2093_v47 = vld [vmem:[#allocation5 + $0x13c] ss:$12 sps:$4 sm:$0xff]  }
  0x47   :  { %1910 = vmatprep.subr.bf16.mxu1 %v2115_v27  ;;  %v2095_v48 = vld [vmem:[#allocation5 + $0x138] ss:$12 sps:$4 sm:$0xff]   ;;  %v2141_v49 = vld [vmem:[#allocation5 + $0xb0] ss:$12 sps:$4 sm:$0xff]   ;;  %v2145_v50 = vld [vmem:[#allocation5 + $0x248] ss:$12 sps:$4 sm:$0xff]  }
  0x48   :  { %v2099_v51 = vld [vmem:[#allocation5 + $0x154] ss:$12 sps:$4 sm:$0xff]   ;;  %v2101_v53 = vld [vmem:[#allocation5 + $0x150] ss:$12 sps:$4 sm:$0xff]   ;;  %v2105_v56 = vld [vmem:[#allocation5 + $0x16c] ss:$12 sps:$4 sm:$0xff]  }
  0x49   :  { %1099 = vmatpush1.bf16.msra.mxu0 %v2068_v10  ;;  %v2146_v52 = vld [vmem:[#allocation5 + $0x188] ss:$12 sps:$4 sm:$0xff]   ;;  %v2150_v55 = vld [vmem:[#allocation5 + $0x260] ss:$12 sps:$4 sm:$0xff]   ;;  %v2155_v59 = vld [vmem:[#allocation5 + $0x278] ss:$12 sps:$4 sm:$0xff]  }
  0x4a   :  { %1100 = vmatprep.subr.bf16.mxu0 %v2069_v11  ;;  %1911 = vmatpush3.bf16.msra.mxu1 %v2116_v28  ;;  %v2107_v57 = vld [vmem:[#allocation5 + $0x168] ss:$12 sps:$4 sm:$0xff]   ;;  %v2151_v58 = vld [vmem:[#allocation5 + $0x1a0] ss:$12 sps:$4 sm:$0xff]   ;;  %v2114_v60 = vld [vmem:[#allocation5 + $0x184] ss:$12 sps:$4 sm:$0xff]  }
  0x4b   :  { %1912 = vmatprep.subr.bf16.mxu1 %v2120_v31  ;;  %v2112_v61 = vld [vmem:[#allocation5 + $0x180] ss:$12 sps:$4 sm:$0xff]   ;;  %v2156_v62 = vld [vmem:[#allocation5 + $0x1b8] ss:$12 sps:$4 sm:$0xff]   ;;  %v2160_v63 = vld [vmem:[#allocation5 + $0x290] ss:$12 sps:$4 sm:$0xff]  }
  0x4c   :  { %v2119_v0 = vld [vmem:[#allocation5 + $0x19c] ss:$12 sps:$4 sm:$0xff]   ;;  %v2117_v1 = vld [vmem:[#allocation5 + $0x198] ss:$12 sps:$4 sm:$0xff]   ;;  %v2124_v4 = vld [vmem:[#allocation5 + $0x1b4] ss:$12 sps:$4 sm:$0xff]  }
  0x4d   :  { %1101 = vmatpush1.bf16.msra.mxu0 %v2071_v12  ;;  %v2161_v2 = vld [vmem:[#allocation5 + $0x1d0] ss:$12 sps:$4 sm:$0xff]   ;;  %v2165_v3 = vld [vmem:[#allocation5 + $0x2a8] ss:$12 sps:$4 sm:$0xff]   ;;  %v2170_v7 = vld [vmem:[#allocation5 + $0x2c0] ss:$12 sps:$4 sm:$0xff]  }
  0x4e   :  { %1102 = vmatprep.subr.bf16.mxu0 %v2072_v15  ;;  %1913 = vmatpush3.bf16.msra.mxu1 %v2121_v32  ;;  %v2122_v5 = vld [vmem:[#allocation5 + $0x1b0] ss:$12 sps:$4 sm:$0xff]   ;;  %v2166_v6 = vld [vmem:[#allocation5 + $0x1e8] ss:$12 sps:$4 sm:$0xff]   ;;  %v2129_v8 = vld [vmem:[#allocation5 + $0x1cc] ss:$12 sps:$4 sm:$0xff]  }
  0x4f   :  { %1914 = vmatprep.subr.bf16.mxu1 %v2125_v35  ;;  %v2171_v9 = vld [vmem:[#allocation5 + $0x200] ss:$12 sps:$4 sm:$0xff]   ;;  %v2127_v10 = vld [vmem:[#allocation5 + $0x1c8] ss:$12 sps:$4 sm:$0xff]   ;;  %v2175_v11 = vld [vmem:[#allocation5 + $0x2d8] ss:$12 sps:$4 sm:$0xff]  }
  0x50   :  { %v62_v12 = vld [vmem:[#allocation2 + $0x8] sm:$0xff]  ;;  %v2139_v19 = vld [vmem:[#allocation5 + $0x1fc] ss:$12 sps:$4 sm:$0xff]   ;;  %v2144_v23 = vld [vmem:[#allocation5 + $0x214] ss:$12 sps:$4 sm:$0xff]   ;;  %s2385_s8 = smov [#allocation8]  }
  0x51   :  { %1103 = vmatpush1.bf16.msra.mxu0 %v2074_v16  ;;  %v2134_v13 = vld [vmem:[#allocation5 + $0x1e4] ss:$12 sps:$4 sm:$0xff]   ;;  %v1728_v14 = vcombine.high %v62_v12, %v62_v12  ;;  %v2132_v15 = vld [vmem:[#allocation5 + $0x1e0] ss:$12 sps:$4 sm:$0xff]   ;;  %v2187_v22 = vld [vmem:[#allocation5 + $0x3c8] ss:$12 sps:$4 sm:$0xff]  }
  0x52   :  { %1104 = vmatprep.subr.bf16.mxu0 %v2075_v20  ;;  %1915 = vmatpush3.bf16.msra.mxu1 %v2126_v37  ;;  %v2176_v16 = vld [vmem:[#allocation5 + $0x218] ss:$12 sps:$4 sm:$0xff]   ;;  %v2180_v17 = vld [vmem:[#allocation5 + $0x2f0] ss:$12 sps:$4 sm:$0xff]   ;;  %v2188_v26 = vld [vmem:[#allocation5 + $0x308] ss:$12 sps:$4 sm:$0xff]  }
  0x53   :  { %1916 = vmatprep.subr.bf16.mxu1 %v2130_v38  ;;  %v2137_v20 = vld [vmem:[#allocation5 + $0x1f8] ss:$12 sps:$4 sm:$0xff]   ;;  %v2142_v24 = vld [vmem:[#allocation5 + $0x210] ss:$12 sps:$4 sm:$0xff]   ;;  %v2192_v27 = vld [vmem:[#allocation5 + $0x3e0] ss:$12 sps:$4 sm:$0xff]  }
  0x54   :  { %v2149_v28 = vld [vmem:[#allocation5 + $0x22c] ss:$12 sps:$4 sm:$0xff]   ;;  %v2154_v32 = vld [vmem:[#allocation5 + $0x244] ss:$12 sps:$4 sm:$0xff]   ;;  %s1715_s9 = sshll.u32 %s2385_s8, 4  ;;  %s1716_s9 = int_to_ptr.vmem [resolvable:$true] %s1715_s9 }
  0x55   :  { %1105 = vmatpush1.bf16.msra.mxu0 %v2077_v21  ;;  %v2181_v21 = vld [vmem:[#allocation5 + $0x230] ss:$12 sps:$4 sm:$0xff]   ;;  %v2197_v31 = vld [vmem:[#allocation5 + $0x3f8] ss:$12 sps:$4 sm:$0xff]   ;;  %s2347_s10 = scalar_lea.vmem %s1716_s9, 128  ;;  %p2352_p11 = scmp.lt.s32.totalorder %s1716_s9, %s1716_s9 }
  0x56   :  { %1106 = vmatprep.subr.bf16.mxu0 %v2078_v25  ;;  %1917 = vmatpush3.bf16.msra.mxu1 %v2131_v41  ;;  %v2456_v25 = vcombine.low %v62_v12, %v62_v12  ;;  %v2202_v35 = vld [vmem:[#allocation5 + $0x410] ss:$12 sps:$4 sm:$0xff]   ;;  %v2157_v37 = vld [vmem:[#allocation5 + $0x258] ss:$12 sps:$4 sm:$0xff]   ;;  %p2348_p10 = scmp.ne.s32.totalorder %s1716_s9, %s2347_s10  ;;  %p2353_p12 = scmp.lt.s32.totalorder %s2347_s10, %s2347_s10 }
  0x57   :  { %1918 = vmatprep.subr.bf16.mxu1 %v2135_v42  ;;  %v2203_v38 = vld [vmem:[#allocation5 + $0x350] ss:$12 sps:$4 sm:$0xff]   ;;  %v2208_v42 = vld [vmem:[#allocation5 + $0x368] ss:$12 sps:$4 sm:$0xff]  }
  0x58   :  { %v2162_v41 = vld [vmem:[#allocation5 + $0x270] ss:$12 sps:$4 sm:$0xff]   ;;  %p2354_p13 = por %p2353_p12, %p2352_p11 }
  0x59   :  { %1107 = vmatpush1.bf16.msra.mxu0 %v2080_v29  ;;  %v2147_v29 = vld [vmem:[#allocation5 + $0x228] ss:$12 sps:$4 sm:$0xff]   ;;  %v2224_v12 = vld [vmem:[#allocation5 + $0x390] ss:$12 sps:$4 sm:$0xff]  }
  0x5a   :  { %1108 = vmatprep.subr.bf16.mxu0 %v2081_v30  ;;  %1919 = vmatpush3.bf16.msra.mxu1 %v2136_v45  ;;  %v2193_v30 = vld [vmem:[#allocation5 + $0x320] ss:$12 sps:$4 sm:$0xff]   ;;  %p2355_p0 = pnand %p2354_p13, %p2348_p10 }
  0x5b   :  { %1920 = vmatprep.subr.bf16.mxu1 %v2140_v46  ;;  %v2169_v46 = vld [vmem:[#allocation5 + $0x28c] ss:$12 sps:$4 sm:$0xff]  }
  0x5d   :  { %1109 = vmatpush1.bf16.msra.mxu0 %v2083_v33  ;;  %v2198_v33 = vld [vmem:[#allocation5 + $0x338] ss:$12 sps:$4 sm:$0xff]  }
  0x5e   :  { %1110 = vmatprep.subr.bf16.mxu0 %v2084_v34  ;;  %1921 = vmatpush3.bf16.msra.mxu1 %v2141_v49  ;;  %v2152_v34 = vld [vmem:[#allocation5 + $0x240] ss:$12 sps:$4 sm:$0xff]   ;;  %v2217_v49 = vld [vmem:[#allocation5 + $0x458] ss:$12 sps:$4 sm:$0xff]  }
  0x5f   :  { %1928 = vmatprep.subr.bf16.mxu1 %v2145_v50  ;;  %v2174_v50 = vld [vmem:[#allocation5 + $0x2a4] ss:$12 sps:$4 sm:$0xff]  }
  0x61   :  { %1111 = vmatpush1.bf16.msra.mxu0 %v2086_v36  ;;  %1287 = vmatmul.mubr.bf16.vlgmr.msra.gmra.mrb[4].mxu1 %v1725_v54  ;;  %v2159_v36 = vld [vmem:[#allocation5 + $0x25c] ss:$12 sps:$4 sm:$0xff]  }
  0x62   :  { %1112 = vmatprep.subr.bf16.mxu0 %v2087_v39  ;;  %1929 = vmatpush3.bf16.msra.mxu1 %v2146_v52  ;;  %v2207_v39 = vld [vmem:[#allocation5 + $0x428] ss:$12 sps:$4 sm:$0xff]   ;;  %v2172_v52 = vld [vmem:[#allocation5 + $0x2a0] ss:$12 sps:$4 sm:$0xff]  }
  0x63   :  { %1930 = vmatprep.subr.bf16.mxu1 %v2150_v55  ;;  %1326 = vmatprep.mubr.bf16.mxu1 %v1728_v14  ;;  %v2223_v55 = vld [vmem:[#allocation5 + $0x3b0] ss:$12 sps:$4 sm:$0xff]  }
  0x65   :  { %1113 = vmatpush1.bf16.msra.mxu0 %v2089_v40  ;;  %v2164_v40 = vld [vmem:[#allocation5 + $0x274] ss:$12 sps:$4 sm:$0xff]  }
  0x66   :  { %1114 = vmatprep.subr.bf16.mxu0 %v2090_v43  ;;  %1931 = vmatpush3.bf16.msra.mxu1 %v2151_v58  ;;  %v63_v43 = vld [vmem:[#allocation2 + $0x10] sm:$0xff] }
  0x67   :  { %1932 = vmatprep.subr.bf16.mxu1 %v2155_v59  ;;  %v1730_v45 = vcombine.high %v63_v43, %v63_v43  ;;  %v2232_v58 = vld [vmem:[#allocation5 + $0x488] ss:$12 sps:$4 sm:$0xff]   ;;  %v2182_v59 = vld [vmem:[#allocation5 + $0x2d0] ss:$12 sps:$4 sm:$0xff]  }
  0x69   :  { %1115 = vmatpush1.bf16.msra.mxu0 %v2092_v44  ;;  %v2212_v44 = vld [vmem:[#allocation5 + $0x440] ss:$12 sps:$4 sm:$0xff]  }
  0x6a   :  { %1116 = vmatprep.subr.bf16.mxu0 %v2093_v47  ;;  %1933 = vmatpush3.bf16.msra.mxu1 %v2156_v62  ;;  %v2213_v47 = vld [vmem:[#allocation5 + $0x380] ss:$12 sps:$4 sm:$0xff]   ;;  %v2383_v62 = vmov 0.0  }
  0x6b   :  { %1934 = vmatprep.subr.bf16.mxu1 %v2160_v63  ;;  %v2189_v63 = vld [vmem:[#allocation5 + $0x2e8] ss:$12 sps:$4 sm:$0xff]  }
  0x6d   :  { %1117 = vmatpush1.bf16.msra.mxu0 %v2095_v48  ;;  %v2167_v48 = vld [vmem:[#allocation5 + $0x288] ss:$12 sps:$4 sm:$0xff]  }
  0x6e   :  { %1118 = vmatprep.subr.bf16.mxu0 %v2099_v51  ;;  %1935 = vmatpush3.bf16.msra.mxu1 %v2161_v2  ;;  %v2218_v51 = vld [vmem:[#allocation5 + $0x398] ss:$12 sps:$4 sm:$0xff]   ;;  %v2201_v2 = vld [vmem:[#allocation5 + $0x31c] ss:$12 sps:$4 sm:$0xff]  }
  0x6f   :  { %1936 = vmatprep.subr.bf16.mxu1 %v2165_v3  ;;  %v2199_v3 = vld [vmem:[#allocation5 + $0x318] ss:$12 sps:$4 sm:$0xff]  }
  0x71   :  { %1119 = vmatpush1.bf16.msra.mxu0 %v2101_v53  ;;  %v2222_v53 = vld [vmem:[#allocation5 + $0x470] ss:$12 sps:$4 sm:$0xff]  }
  0x72   :  { %1120 = vmatprep.subr.bf16.mxu0 %v2105_v56  ;;  %1937 = vmatpush3.bf16.msra.mxu1 %v2166_v6  ;;  %v2177_v56 = vld [vmem:[#allocation5 + $0x2b8] ss:$12 sps:$4 sm:$0xff]  }
  0x73   :  { %1938 = vmatprep.subr.bf16.mxu1 %v2170_v7  ;;  %v2211_v6 = vld [vmem:[#allocation5 + $0x34c] ss:$12 sps:$4 sm:$0xff]   ;;  %v2209_v7 = vld [vmem:[#allocation5 + $0x348] ss:$12 sps:$4 sm:$0xff]  }
  0x75   :  { %1121 = vmatpush1.bf16.msra.mxu0 %v2107_v57  ;;  %v2184_v57 = vld [vmem:[#allocation5 + $0x2d4] ss:$12 sps:$4 sm:$0xff]  }
  0x76   :  { %1131 = vmatprep.subr.bf16.mxu0 %v2114_v60  ;;  %1939 = vmatpush3.bf16.msra.mxu1 %v2171_v9  ;;  %v2459_v60 = vcombine.low %v63_v43, %v63_v43  ;;  %v2214_v9 = vld [vmem:[#allocation5 + $0x360] ss:$12 sps:$4 sm:$0xff]  }
  0x77   :  { %1940 = vmatprep.subr.bf16.mxu1 %v2175_v11  ;;  %v2226_v11 = vld [vmem:[#allocation5 + $0x394] ss:$12 sps:$4 sm:$0xff]  }
  0x78   :  { %1123 = vmatmul.mubr.bf16.vlgmr.msra.gmra.mrb[0].mxu0 %v1725_v54  ;;  %v2179_v54 = vld [vmem:[#allocation5 + $0x2bc] ss:$12 sps:$4 sm:$0xff]  }
  0x79   :  { %1132 = vmatpush1.bf16.msra.mxu0 %v2112_v61  ;;  %1163 = vmatprep.mubr.bf16.mxu0 %v1728_v14  ;;  %v2191_v61 = vld [vmem:[#allocation5 + $0x2ec] ss:$12 sps:$4 sm:$0xff]   ;;  %v2229_v14 = vld [vmem:[#allocation5 + $0x3a8] ss:$12 sps:$4 sm:$0xff]  }
  0x7a   :  { %1133 = vmatprep.subr.bf16.mxu0 %v2119_v0  ;;  %1941 = vmatpush3.bf16.msra.mxu1 %v2176_v16  ;;  %v2196_v0 = vld [vmem:[#allocation5 + $0x304] ss:$12 sps:$4 sm:$0xff]   ;;  %v2233_v16 = vld [vmem:[#allocation5 + $0x3c0] ss:$12 sps:$4 sm:$0xff]  }
  0x7b   :  { %1942 = vmatprep.subr.bf16.mxu1 %v2180_v17  ;;  %v2238_v17 = vld [vmem:[#allocation5 + $0x3dc] ss:$12 sps:$4 sm:$0xff]  }
  0x7d   :  { %1134 = vmatpush1.bf16.msra.mxu0 %v2117_v1  ;;  %v2194_v1 = vld [vmem:[#allocation5 + $0x300] ss:$12 sps:$4 sm:$0xff]  }
  0x7e   :  { %1135 = vmatprep.subr.bf16.mxu0 %v2124_v4  ;;  %1943 = vmatpush3.bf16.msra.mxu1 %v2181_v21  ;;  %v2206_v4 = vld [vmem:[#allocation5 + $0x334] ss:$12 sps:$4 sm:$0xff]   ;;  %v2239_v21 = vld [vmem:[#allocation5 + $0x3f0] ss:$12 sps:$4 sm:$0xff]  }
  0x7f   :  { %1950 = vmatprep.subr.bf16.mxu1 %v2187_v22  ;;  %v2244_v22 = vld [vmem:[#allocation5 + $0x40c] ss:$12 sps:$4 sm:$0xff]  }
  0x81   :  { %1136 = vmatpush1.bf16.msra.mxu0 %v2122_v5  ;;  %1327 = vmatmul.mubr.bf16.vlgmr.msra.gmra.mrb[8].mxu1 %v2456_v25  ;;  %v2204_v5 = vld [vmem:[#allocation5 + $0x330] ss:$12 sps:$4 sm:$0xff]  }
  0x82   :  { %1137 = vmatprep.subr.bf16.mxu0 %v2129_v8  ;;  %1951 = vmatpush3.bf16.msra.mxu1 %v2188_v26  ;;  %v2216_v8 = vld [vmem:[#allocation5 + $0x364] ss:$12 sps:$4 sm:$0xff]   ;;  %v2250_v26 = vld [vmem:[#allocation5 + $0x43c] ss:$12 sps:$4 sm:$0xff]  }
  0x83   :  { %1952 = vmatprep.subr.bf16.mxu1 %v2192_v27  ;;  %1366 = vmatprep.mubr.bf16.mxu1 %v1730_v45  ;;  %v2248_v27 = vld [vmem:[#allocation5 + $0x438] ss:$12 sps:$4 sm:$0xff]  }
  0x85   :  { %1138 = vmatpush1.bf16.msra.mxu0 %v2127_v10  ;;  %v2221_v10 = vld [vmem:[#allocation5 + $0x37c] ss:$12 sps:$4 sm:$0xff]  }
  0x86   :  { %1139 = vmatprep.subr.bf16.mxu0 %v2134_v13  ;;  %1953 = vmatpush3.bf16.msra.mxu1 %v2193_v30  ;;  %v2231_v13 = vld [vmem:[#allocation5 + $0x3ac] ss:$12 sps:$4 sm:$0xff]  }
  0x87   :  { %1954 = vmatprep.subr.bf16.mxu1 %v2197_v31  ;;  %v2256_v30 = vld [vmem:[#allocation5 + $0x46c] ss:$12 sps:$4 sm:$0xff]   ;;  %v2254_v31 = vld [vmem:[#allocation5 + $0x468] ss:$12 sps:$4 sm:$0xff]  }
  0x89   :  { %1140 = vmatpush1.bf16.msra.mxu0 %v2132_v15  ;;  %v2235_v15 = vld [vmem:[#allocation5 + $0x3c4] ss:$12 sps:$4 sm:$0xff]  }
  0x8a   :  { %1141 = vmatprep.subr.bf16.mxu0 %v2139_v19  ;;  %1955 = vmatpush3.bf16.msra.mxu1 %v2198_v33  ;;  %v2236_v19 = vld [vmem:[#allocation5 + $0x3d8] ss:$12 sps:$4 sm:$0xff]  }
  0x8b   :  { %1956 = vmatprep.subr.bf16.mxu1 %v2202_v35  ;;  %v2258_v33 = vld [vmem:[#allocation7] sm:$0xff]   ;;  %v2260_v35 = vld [vmem:[#allocation7 + $0x8] sm:$0xff]  }
  0x8d   :  { %1142 = vmatpush1.bf16.msra.mxu0 %v2137_v20  ;;  %v2241_v20 = vld [vmem:[#allocation5 + $0x3f4] ss:$12 sps:$4 sm:$0xff]  }
  0x8e   :  { %1143 = vmatprep.subr.bf16.mxu0 %v2144_v23  ;;  %1957 = vmatpush3.bf16.msra.mxu1 %v2203_v38  ;;  %v2242_v23 = vld [vmem:[#allocation5 + $0x408] ss:$12 sps:$4 sm:$0xff]  }
  0x8f   :  { %1958 = vmatprep.subr.bf16.mxu1 %v2207_v39  ;;  %v2263_v38 = vld [vmem:[#allocation7 + $0x58] sm:$0xff]  }
  0x90   :  { %v2264_v39 = vld [vmem:[#allocation7 + $0x18] sm:$0xff]  }
  0x91   :  { %1144 = vmatpush1.bf16.msra.mxu0 %v2142_v24  ;;  %v2247_v24 = vld [vmem:[#allocation5 + $0x424] ss:$12 sps:$4 sm:$0xff]  }
  0x92   :  { %1145 = vmatprep.subr.bf16.mxu0 %v2149_v28  ;;  %1959 = vmatpush3.bf16.msra.mxu1 %v2208_v42  ;;  %v2253_v28 = vld [vmem:[#allocation5 + $0x454] ss:$12 sps:$4 sm:$0xff]  }
  0x93   :  { %1960 = vmatprep.subr.bf16.mxu1 %v2212_v44  ;;  %v2267_v42 = vld [vmem:[#allocation7 + $0x68] sm:$0xff]  }
  0x95   :  { %1146 = vmatpush1.bf16.msra.mxu0 %v2147_v29  ;;  %v2251_v29 = vld [vmem:[#allocation5 + $0x450] ss:$12 sps:$4 sm:$0xff]  }
  0x96   :  { %1147 = vmatprep.subr.bf16.mxu0 %v2154_v32  ;;  %1961 = vmatpush3.bf16.msra.mxu1 %v2213_v47  ;;  %v2257_v32 = vld [vmem:[#allocation7 + $0x40] sm:$0xff]  }
  0x97   :  { %1962 = vmatprep.subr.bf16.mxu1 %v2217_v49 }
  0x99   :  { %1148 = vmatpush1.bf16.msra.mxu0 %v2152_v34  ;;  %v2259_v34 = vld [vmem:[#allocation7 + $0x48] sm:$0xff]  }
  0x9a   :  { %1149 = vmatprep.subr.bf16.mxu0 %v2159_v36  ;;  %1963 = vmatpush3.bf16.msra.mxu1 %v2218_v51  ;;  %v2261_v36 = vld [vmem:[#allocation7 + $0x50] sm:$0xff]  }
  0x9b   :  { %1964 = vmatprep.subr.bf16.mxu1 %v2222_v53  ;;  %v2269_v53 = vld [vmem:[#allocation7 + $0x70] sm:$0xff]  }
  0x9d   :  { %1150 = vmatpush1.bf16.msra.mxu0 %v2157_v37  ;;  %v2262_v37 = vld [vmem:[#allocation7 + $0x10] sm:$0xff]  }
  0x9e   :  { %1151 = vmatprep.subr.bf16.mxu0 %v2164_v40  ;;  %1965 = vmatpush3.bf16.msra.mxu1 %v2223_v55  ;;  %v2265_v40 = vld [vmem:[#allocation7 + $0x60] sm:$0xff]   ;;  %v2271_v55 = vld [vmem:[#allocation7 + $0x78] sm:$0xff]  }
  0x9f   :  { %2005 = vmatprep.subr.bf16.mxu1 %v2383_v62 }
  0xa1   :  { %1152 = vmatpush1.bf16.msra.mxu0 %v2162_v41  ;;  %1367 = vmatmul.mubr.bf16.vlgmr.msra.gmra.mrb[12].mxu1 %v2459_v60  ;;  %v2266_v41 = vld [vmem:[#allocation7 + $0x20] sm:$0xff]  }
  0xa2   :  { %1153 = vmatprep.subr.bf16.mxu0 %v2169_v46  ;;  %2006 = vmatpush3.bf16.msra.mxu1 %v2232_v58 }
  0xa3   :  { %2007 = vmatprep.mubr.msk.bf16.mxu1 %vm2384_vm1, %v2383_v62  ;;  %1974 = vmatprep.subr.bf16.mxu1 %v2257_v32 }
  0xa5   :  { %1154 = vmatpush1.bf16.msra.mxu0 %v2167_v48 }
  0xa6   :  { %1155 = vmatprep.subr.bf16.mxu0 %v2174_v50 }
  0xa9   :  { %1156 = vmatpush1.bf16.msra.mxu0 %v2172_v52  ;;  %2008 = vmatmul.mubr.msk.bf16.vlgmr.msra.gmra.mrb[16].mxu1 %vm1086_vm0, %v2452_v18  ;;  %v2219_v18 = vld [vmem:[#allocation5 + $0x378] ss:$12 sps:$4 sm:$0xff]  }
  0xaa   :  { %1157 = vmatprep.subr.bf16.mxu0 %v2179_v54  ;;  %1975 = vmatpush3.bf16.msra.mxu1 %v2258_v33  ;;  %v2268_v52 = vld [vmem:[#allocation7 + $0x28] sm:$0xff]   ;;  %v2270_v54 = vld [vmem:[#allocation7 + $0x30] sm:$0xff]  }
  0xab   :  { %1976 = vmatprep.subr.bf16.mxu1 %v2259_v34  ;;  %v2273_v34 = vld [vmem:[#allocation7 + $0x80] sm:$0xff]  }
  0xad   :  { %1158 = vmatpush1.bf16.msra.mxu0 %v2177_v56  ;;  %v2272_v56 = vld [vmem:[#allocation7 + $0x38] sm:$0xff]  }
  0xae   :  { %1159 = vmatprep.subr.bf16.mxu0 %v2184_v57  ;;  %1977 = vmatpush3.bf16.msra.mxu1 %v2260_v35  ;;  %v263_v57 = vlaneseq }
  0xaf   :  { %1978 = vmatprep.subr.bf16.mxu1 %v2261_v36  ;;  %v2274_v36 = vld [vmem:[#allocation7 + $0x88] sm:$0xff]  }
  0xb0   :  { %v264_v58 = vshrl.u32 %v263_v57, 7 }
  0xb1   :  { %1160 = vmatpush1.bf16.msra.mxu0 %v2182_v59 }
  0xb2   :  { %1161 = vmatprep.subr.bf16.mxu0 %v2191_v61  ;;  %1979 = vmatpush3.bf16.msra.mxu1 %v2262_v37  ;;  %v273_v59 = vsub.s32 2, %v264_v58  ;;  %v2275_v37 = vld [vmem:[#allocation7 + $0x90] sm:$0xff]  }
  0xb3   :  { %1980 = vmatprep.subr.bf16.mxu1 %v2263_v38  ;;  %v2276_v38 = vld [vmem:[#allocation7 + $0x98] sm:$0xff]  }
  0xb5   :  { %1162 = vmatpush1.bf16.msra.mxu0 %v2189_v63 }
  0xb6   :  { %1172 = vmatprep.subr.bf16.mxu0 %v2196_v0  ;;  %1981 = vmatpush3.bf16.msra.mxu1 %v2264_v39  ;;  %v2277_v39 = vld [vmem:[#allocation7 + $0xa0] sm:$0xff]  }
  0xb7   :  { %1982 = vmatprep.subr.bf16.mxu1 %v2265_v40  ;;  %v2278_v40 = vld [vmem:[#allocation7 + $0xa8] sm:$0xff]  }
  0xb8   :  { %1164 = vmatmul.mubr.bf16.vlgmr.msra.gmra.mrb[0].mxu0 %v2456_v25  ;;  %v2245_v25 = vld [vmem:[#allocation5 + $0x420] ss:$12 sps:$4 sm:$0xff]  }
  0xb9   :  { %1173 = vmatpush1.bf16.msra.mxu0 %v2194_v1  ;;  %1204 = vmatprep.mubr.bf16.mxu0 %v1730_v45 }
  0xba   :  { %1174 = vmatprep.subr.bf16.mxu0 %v2201_v2  ;;  %1983 = vmatpush3.bf16.msra.mxu1 %v2266_v41  ;;  %v2279_v41 = vld [vmem:[#allocation7 + $0xb0] sm:$0xff]  }
  0xbb   :  { %1984 = vmatprep.subr.bf16.mxu1 %v2267_v42 }
  0xbd   :  { %1175 = vmatpush1.bf16.msra.mxu0 %v2199_v3 }
  0xbe   :  { %1176 = vmatprep.subr.bf16.mxu0 %v2206_v4  ;;  %1985 = vmatpush3.bf16.msra.mxu1 %v2268_v52 }
  0xbf   :  { %1986 = vmatprep.subr.bf16.mxu1 %v2269_v53 }
  0xc1   :  { %1177 = vmatpush1.bf16.msra.mxu0 %v2204_v5 }
  0xc2   :  { %1178 = vmatprep.subr.bf16.mxu0 %v2211_v6  ;;  %1987 = vmatpush3.bf16.msra.mxu1 %v2270_v54 }
  0xc3   :  { %1988 = vmatprep.subr.bf16.mxu1 %v2271_v55 }
  0xc5   :  { %1179 = vmatpush1.bf16.msra.mxu0 %v2209_v7 }
  0xc6   :  { %1180 = vmatprep.subr.bf16.mxu0 %v2216_v8  ;;  %1989 = vmatpush3.bf16.msra.mxu1 %v2272_v56 }
  0xc7   :  { %2011 = vmatprep.subr.bf16.mxu1 %v2383_v62 }
  0xc9   :  { %1181 = vmatpush1.bf16.msra.mxu0 %v2214_v9 }
  0xca   :  { %1182 = vmatprep.subr.bf16.mxu0 %v2221_v10 }
  0xcd   :  { %1183 = vmatpush1.bf16.msra.mxu0 %v2219_v18 }
  0xce   :  { %1184 = vmatprep.subr.bf16.mxu0 %v2226_v11 }
  0xd1   :  { %1185 = vmatpush1.bf16.msra.mxu0 %v2224_v12 }
  0xd2   :  { %1186 = vmatprep.subr.bf16.mxu0 %v2231_v13 }
  0xd5   :  { %1187 = vmatpush1.bf16.msra.mxu0 %v2229_v14 }
  0xd6   :  { %1188 = vmatprep.subr.bf16.mxu0 %v2235_v15 }
  0xd9   :  { %1189 = vmatpush1.bf16.msra.mxu0 %v2233_v16  ;;  %v265_v16 = vsub.s32 0, %v264_v58 }
  0xda   :  { %1190 = vmatprep.subr.bf16.mxu0 %v2238_v17  ;;  %v269_v17 = vsub.s32 1, %v264_v58 }
  0xdd   :  { %1191 = vmatpush1.bf16.msra.mxu0 %v2236_v19 }
  0xde   :  { %1192 = vmatprep.subr.bf16.mxu0 %v2241_v20 }
  0xe1   :  { %1193 = vmatpush1.bf16.msra.mxu0 %v2239_v21 }
  0xe2   :  { %1194 = vmatprep.subr.bf16.mxu0 %v2244_v22 }
  0xe5   :  { %1195 = vmatpush1.bf16.msra.mxu0 %v2242_v23 }
  0xe6   :  { %1196 = vmatprep.subr.bf16.mxu0 %v2247_v24 }
  0xe9   :  { %1197 = vmatpush1.bf16.msra.mxu0 %v2245_v25 }
  0xea   :  { %1198 = vmatprep.subr.bf16.mxu0 %v2250_v26 }
  0xed   :  { %1199 = vmatpush1.bf16.msra.mxu0 %v2248_v27 }
  0xee   :  { %1200 = vmatprep.subr.bf16.mxu0 %v2253_v28 }
  0xf1   :  { %1201 = vmatpush1.bf16.msra.mxu0 %v2251_v29 }
  0xf2   :  { %1202 = vmatprep.subr.bf16.mxu0 %v2256_v30 }
  0xf5   :  { %1203 = vmatpush1.bf16.msra.mxu0 %v2254_v31 }
  0xf8   :  { %1205 = vmatmul.mubr.bf16.vlgmr.msra.gmra.mrb[0].mxu0 %v2459_v60  ;;  %v261_v60 = vld [vmem:[%s2499_s2] sm:$0x7] }
  0xf9   :  { %v274_v61 = vrot.slane %v261_v60, %v273_v59  ;;  %v266_v19 = vrot.slane %v261_v60, %v265_v16  ;;  %v270_v20 = vrot.slane %v261_v60, %v269_v17 }
 0x114   :  { %v1247_v43 = vpop.f32.mrb[0].mxu1 }
 0x115   :  { %v1249_v44 = vpop.f32.mrb[1].mxu1 }
 0x116   :  { %v1251_v45 = vpop.f32.mrb[2].mxu1 }
 0x117   :  { %v1252_v46 = vpop.f32.mrb[3].mxu1 }
 0x134   :  { %v1922_v47 = vpop.f32.mrb[4].mxu1 }
 0x135   :  { %v1923_v48 = vpop.f32.mrb[5].mxu1 }
 0x136   :  { %v1924_v49 = vadd.f32 %v1923_v48, %v1922_v47  ;;  %v1925_v50 = vpop.f32.mrb[6].mxu1 }
 0x137   :  { %v1926_v51 = vpop.f32.mrb[7].mxu1 }
 0x138   :  { %v1289_v63 = vadd.f32 %v1924_v49, %v274_v61  ;;  %v1881_v51 = vld [vmem:[%s2501_s4] ss:$0 sm:$0xff] }
 0x154   :  { %v1944_v0 = vpop.f32.mrb[8].mxu1 }
 0x155   :  { %v1945_v1 = vpop.f32.mrb[9].mxu1 }
 0x156   :  { %v1946_v2 = vadd.f32 %v1945_v1, %v1944_v0  ;;  %v1947_v3 = vpop.f32.mrb[10].mxu1 }
 0x157   :  { %v1948_v4 = vpop.f32.mrb[11].mxu1 }
 0x158   :  { %v1329_v5 = vadd.f32 %v1946_v2, %v1289_v63 }
 0x174   :  { %v1966_v6 = vpop.f32.mrb[12].mxu1 }
 0x175   :  { %v1967_v7 = vpop.f32.mrb[13].mxu1 }
 0x176   :  { %v1968_v8 = vadd.f32 %v1967_v7, %v1966_v6  ;;  %v1969_v9 = vpop.f32.mrb[14].mxu1 }
 0x177   :  { %v1970_v10 = vpop.f32.mrb[15].mxu1 }
 0x178   :  { %v1369_v18 = vadd.f32 %v1968_v8, %v1329_v5 }
 0x17c   :  { %v1408_v11 = vpop.f32.mrb[16].mxu1 }
 0x17d   :  { %v1409_v12 = vadd.f32 %v1408_v11, %v1369_v18  ;;  %v2009_v13 = vpop.f32.mrb[17].mxu1 }
 0x17e   :  { %v1411_v14 = vpop.f32.mrb[18].mxu1 }
 0x17f   :  { %v2010_v15 = vpop.f32.mrb[19].mxu1  ;;  %v1419_v42 = vmul.f32 0.2, %v1409_v12  ;;  %vm1416_vm4 = vcmp.gt.f32.partialorder %v1409_v12, 0.0 }
 0x1cb   :  { %v1206_v21 = vpop.f32.mrb[0].mxu0 }
 0x1cc   :  { %v2031_v22 = vadd.f32 %v1206_v21, %v266_v19  ;;  %v1208_v23 = vpop.f32.mrb[1].mxu0 }
 0x1cd   :  { %v2033_v24 = vadd.f32 %v1208_v23, %v270_v20  ;;  %v1210_v25 = vpop.f32.mrb[2].mxu0 }
 0x1ce   :  { %v2032_v26 = vadd.f32 %v2031_v22, %v1247_v43  ;;  %v1211_v27 = vpop.f32.mrb[3].mxu0  ;;  %v2280_v43 = vld [vmem:[#allocation7 + $0xb8] sm:$0xff]  }
 0x1cf   :  { %v2034_v28 = vadd.f32 %v2033_v24, %v1249_v44  ;;  %v1422_v44 = vsel %vm1416_vm4, %v1409_v12, %v1419_v42 }
 0x1d0   :  { %vm1414_vm2 = vcmp.gt.f32.partialorder %v2032_v26, 0.0  ;;  %v1417_v29 = vmul.f32 0.2, %v2032_v26  ;;  %v1425_v45 = vpack.c.bf16 %v1422_v44, %v1422_v44 }
 0x1d1   :  { %v1418_v30 = vmul.f32 0.2, %v2034_v28  ;;  %vm1415_vm3 = vcmp.gt.f32.partialorder %v2034_v28, 0.0 }
 0x1d2   :  { %v1420_v31 = vsel %vm1414_vm2, %v2032_v26, %v1417_v29 }
 0x1d3   :  { %v1421_v32 = vsel %vm1415_vm3, %v2034_v28, %v1418_v30  ;;  %v1423_v35 = vpack.c.bf16 %v1420_v31, %v1420_v31 }
 0x1d4   :  { %v1424_v33 = vpack.c.bf16 %v1421_v32, %v1421_v32 }
 0x1d6   :  { %1657 = vmatprep.mubr.bf16.mxu1 %v1424_v33 }
 0x1d7   :  { %1658 = vmatmul.mubr.bf16.vlgmr.msra.gmra.mrb[20].mxu1 %v1423_v35 }
 0x1d8   :  { %2012 = vmatpush3.bf16.msra.mxu1 %v2273_v34  ;;  %2027 = vmatprep.mubr.msk.bf16.mxu1 %vm2384_vm1, %v2383_v62 }
 0x1d9   :  { %2013 = vmatprep.subr.bf16.mxu1 %v2383_v62 }
 0x1dc   :  { %2014 = vmatpush3.bf16.msra.mxu1 %v2274_v36 }
 0x1dd   :  { %2015 = vmatprep.subr.bf16.mxu1 %v2383_v62 }
 0x1e0   :  { %2016 = vmatpush3.bf16.msra.mxu1 %v2275_v37 }
 0x1e1   :  { %2017 = vmatprep.subr.bf16.mxu1 %v2383_v62 }
 0x1e4   :  { %2018 = vmatpush3.bf16.msra.mxu1 %v2276_v38 }
 0x1e5   :  { %2019 = vmatprep.subr.bf16.mxu1 %v2383_v62 }
 0x1e8   :  { %2020 = vmatpush3.bf16.msra.mxu1 %v2277_v39 }
 0x1e9   :  { %2021 = vmatprep.subr.bf16.mxu1 %v2383_v62 }
 0x1ec   :  { %2022 = vmatpush3.bf16.msra.mxu1 %v2278_v40 }
 0x1ed   :  { %2023 = vmatprep.subr.bf16.mxu1 %v2383_v62 }
 0x1f0   :  { %2024 = vmatpush3.bf16.msra.mxu1 %v2279_v41 }
 0x1f1   :  { %2025 = vmatprep.subr.bf16.mxu1 %v2383_v62 }
 0x1f4   :  { %2026 = vmatpush3.bf16.msra.mxu1 %v2280_v43 }
 0x1f7   :  { %2028 = vmatmul.mubr.bf16.vlgmr.msra.gmra.mrb[24].mxu1 %v1425_v45 }
 0x2aa   :  { %v1990_v46 = vpop.f32.mrb[20].mxu1 }
 0x2ab   :  { %v1991_v47 = vpop.f32.mrb[21].mxu1 }
 0x2ac   :  { %v1992_v48 = vadd.f32 %v1991_v47, %v1990_v46  ;;  %v1993_v49 = vpop.f32.mrb[22].mxu1 }
 0x2ad   :  { %v1994_v50 = vpop.f32.mrb[23].mxu1 }
 0x2ae   :  { %v1660_v52 = vadd.f32 %v1992_v48, %v1881_v51 }
 0x2ca   :  { %v1699_v53 = vpop.f32.mrb[24].mxu1 }
 0x2cb   :  { %v1700_v54 = vadd.f32 %v1699_v53, %v1660_v52  ;;  %v2029_v55 = vpop.f32.mrb[25].mxu1 }
 0x2cc   :  { %v1702_v62 = vpop.f32.mrb[26].mxu1 }
 0x2cd   :  { %v1706_v56 = vmul.f32 0.2, %v1700_v54  ;;  %v2030_v57 = vpop.f32.mrb[27].mxu1  ;;  %vm1705_vm5 = vcmp.gt.f32.partialorder %v1700_v54, 0.0 }
 0x2cf   :  { %v1707_v58 = vsel %vm1705_vm5, %v1700_v54, %v1706_v56 }
 0x2d0   :  { %1708 = vst [vmem:[#allocation8] sm:$0xff] %v1707_v58 }
 0x2d1   :  { %2358 = shalt.err (!%p2355_p0)
}
 0x2d2   :  { %s2359_s12 = scalar_lea.hbm %s2502_s5, 128 }
 0x2d3   :  { %p2360_p1 = scmp.ne.s32.totalorder %s2502_s5, %s2359_s12  ;;  %p2363_p2 = scmp.lt.u32.totalorder %s2359_s12, %s2502_s5 }
 0x2d5   :  { %p2365_p3 = pnand %p2363_p2, %p2360_p1 }
 0x2d7   :  { %2368 = shalt.err (!%p2365_p3)
}
 0x2d8   :  { %1718 = dma.vmem_to_hbm [thread:$0]  %s1716_s9, 128, %s2502_s5, [#allocation4]  }
 0x2d9   :  { %2373 = dma.done.wait [#allocation4], 128  }
 0x2da   :  { %2374 = vsyncadd [#allocation4], 4294967168 }
 0x2db   :  { %1722 = vsyncpa [#allocation3], 1 }
 0x2dc   :  { %1723 = vsyncpa [#allocation6], 1 }
 0x2dd   :  { %1724 = vsyncpa [#allocation4], 1 }

</bundles_post_ra>
